<compile_context>
chip_gen: v7x
topology: tpu7x:2x2x1
jax: 0.10.0
libtpu: 0.0.40
codegen_flags: <defaults>
</compile_context>

<pallas_src>
import math
import jax
import jax.numpy as jnp
from jax.experimental import pallas as pl
from jax.experimental.pallas import tpu as pltpu


def _round_up(x, m):
    return ((x + m - 1) // m) * m


# --------------------------------------------------------------------------
# Fused kernel: scores + L2-normalize + gathering / contrastive / gather-score
# --------------------------------------------------------------------------
def _make_fused_kernel(temperature):
    inv_t = 1.0 / float(temperature)

    def kernel(qT_ref, k_ref, mem_ref, memsq_ref, o_ref):
        qT = qT_ref[0]                # (D, tile_c)  queries tile, pre-transposed
        k = k_ref[0]                  # (S, D)       keys (resident per batch)
        mem = mem_ref[...]            # (M, S)       learned memory bank (resident)
        mem_sq = memsq_ref[...]       # (M, 1)       precomputed ||mem_m||^2 (resident)
        M = mem.shape[0]

        # ---- scores (transposed): sT[s, c] = <k_s, q_c> ---------------------
        # bf16 operands for the large MXU matmul (f32 MXU passes cost ~3x),
        # f32 accumulation.  Canonical orientation: LHS contracts last dim,
        # RHS contracts first dim -> no XLU transpose.
        sT = jax.lax.dot_general(
            k.astype(jnp.bfloat16), qT.astype(jnp.bfloat16),
            (((1,), (0,)), ((), ())),
            preferred_element_type=jnp.float32)                      # (S, tile_c)

        # ---- F.normalize(dim=-1), folded into the logits --------------------
        # w_c = s_c / max(||s_c||, 1e-12)  =>  <w_c, mem_m> = <s_c, mem_m> * inv_norm_c
        sumsq = jnp.sum(sT * sT, axis=0, keepdims=True)              # (1, tile_c)
        inv_norm = jax.lax.rsqrt(jnp.maximum(sumsq, 1e-24))          # EUP rsqrt
        w_sq = sumsq * (inv_norm * inv_norm)                         # == ||w_c||^2

        # small logits matmul (M rows << MXU width): keep f32 operands to
        # preserve logit precision for the cancellation-prone gathering loss.
        logitsT = jax.lax.dot_general(
            mem, sT, (((1,), (0,)), ((), ())),
            preferred_element_type=jnp.float32) * inv_norm           # (M, tile_c)

        # nearest memory item (argmax(softmax) == argmax(logits)); the positive
        # logit is exactly lmax, so no onehot*logits reduction is needed.
        lmax = jnp.max(logitsT, axis=0, keepdims=True)               # (1, tile_c)
        iota = jax.lax.broadcasted_iota(jnp.int32, logitsT.shape, 0).astype(jnp.float32)
        first_idx = jnp.min(jnp.where(logitsT == lmax, iota, float(M)),
                            axis=0, keepdims=True)                   # (1, tile_c)
        onehot = (iota == first_idx).astype(jnp.float32)             # (M, tile_c)
        pos_memsq = jnp.sum(onehot * mem_sq, axis=0, keepdims=True)  # (1, tile_c)

        # gathering loss: ||w - mem[idx]||^2 = ||w||^2 - 2*lmax + ||mem[idx]||^2
        gl = jnp.maximum(w_sq - 2.0 * lmax + pos_memsq, 0.0)         # (1, tile_c)

        # shared shift for both softmax-like paths (one subtraction on the VPU)
        shift = logitsT - lmax                                       # (M, tile_c)
        es = jnp.exp(shift)
        denom = jnp.sum(es, axis=0, keepdims=True)                   # (1, tile_c)
        # per-query max memory-attention softmax score = 1 / sum(exp(shift))
        gs = pl.reciprocal(denom, approx=True)                       # (1, tile_c)

        # contrastive (InfoNCE), positive = nearest memory item:
        #   lse(logits/T) - lmax/T == log(sum_m exp(shift_m / T))
        if inv_t == 1.0:
            cl = jnp.log(denom)                                      # share the exp
        else:
            cl = jnp.log(jnp.sum(jnp.exp(shift * inv_t), axis=0, keepdims=True))

        # single lane-dense 3-sublane store: rows = [gathering, contrast, score]
        o_ref[0] = jnp.concatenate([gl, cl, gs], axis=0)             # (3, tile_c)

    return kernel


def attention_losses(queries, keys, mem_items, temperature, *, tile_c=None,
                     vmem_tile_budget_bytes=32 << 20):
    """Returns packed (N, 3, C) array: [:,0]=gathering, [:,1]=contrast, [:,2]=gather score."""
    N, C, D = queries.shape
    Nk, S, Dk = keys.shape
    M, fea = mem_items.shape
    assert Nk == N and Dk == D
    if fea != S:
        raise ValueError(
            f"mem_items fea_dim ({fea}) must equal the key sequence length ({S})")

    # ---- tile_c from an explicit VMEM budget (fits v7x's 64 MiB with headroom):
    # per-step bytes ~ 4*(2*D*tile_c [qT, dbl-buf] + 3*S*tile_c [sT/bf16/logits tmp]
    #                    + 2*M*tile_c + 2*3*tile_c [out, dbl-buf])
    #                 + 4*(2*S*D + 2*M*S + 2*M)   [resident keys / mem / mem_sq]
    if tile_c is None:
        per_col = 4 * (2 * D + 3 * S + 2 * M + 6)
        fixed = 4 * (2 * S * D + 2 * M * S + 2 * M)
        cap = max((vmem_tile_budget_bytes - fixed) // per_col, 128)
        cap = max((cap // 128) * 128, 128)
        cap = min(cap, 1024)                     # diminishing returns past ~1024 lanes
        tile_c = min(cap, _round_up(C, 128))     # don't exceed (padded) C

    # pad C so every output block is an unmasked, lane-dense multiple of 128
    C_pad = _round_up(C, tile_c)
    num_c = C_pad // tile_c

    # queries pre-transposed to (N, D, C_pad): both kernel matmuls land in
    # canonical MXU orientation (cheap HBM-side layout plumbing).
    qT = jnp.swapaxes(queries, 1, 2)             # (N, D, C)
    if C_pad != C:
        qT = jnp.pad(qT, ((0, 0), (0, 0), (0, C_pad - C)))

    # grid-invariant ||mem_m||^2 hoisted out of the kernel
    mem_sq = jnp.sum(mem_items * mem_items, axis=-1, keepdims=True)  # (M, 1)

    kernel = _make_fused_kernel(temperature)
    packed = pl.pallas_call(
        kernel,
        out_shape=jax.ShapeDtypeStruct((N, 3, C_pad), jnp.float32),
        grid_spec=pltpu.PrefetchScalarGridSpec(
            num_scalar_prefetch=0,
            grid=(N, num_c),
            in_specs=[
                pl.BlockSpec((1, D, tile_c), lambda n, c: (n, 0, c)),  # queries^T tile
                pl.BlockSpec((1, S, D), lambda n, c: (n, 0, 0)),       # keys (resident per batch)
                pl.BlockSpec((M, S), lambda n, c: (0, 0)),             # memory bank (resident)
                pl.BlockSpec((M, 1), lambda n, c: (0, 0)),             # ||mem||^2 (resident)
            ],
            out_specs=pl.BlockSpec((1, 3, tile_c), lambda n, c: (n, 0, c)),
        ),
        compiler_params=pltpu.CompilerParams(
            dimension_semantics=("parallel", "parallel"),
            vmem_limit_bytes=48 << 20,           # above default scoped, below v7x physical
        ),
    )(qT, keys, mem_items, mem_sq)

    return packed[:, :, :C] if C_pad != C else packed


# --------------------------------------------------------------------------
# Module wrapper
# --------------------------------------------------------------------------
class AttentionPallas:
    def __init__(self, memory, fea_dim, contras_temperature, key):
        self.n_memory = memory
        self.fea_dim = fea_dim
        self.temperature = contras_temperature
        # DMP memory bank (M, fea_dim), deterministic init
        self.mem_items = (
            jax.random.normal(key, (memory, fea_dim), dtype=jnp.float32)
            / math.sqrt(fea_dim)
        )

    def __call__(self, queries, keys):
        """
        queries : (N, C, D) float32
        keys    : (N, S, D) float32
        returns : attn_loss (N, C), attn_contrast scalar, attn_gather scalar
        """
        packed = attention_losses(queries, keys, self.mem_items, self.temperature)
        attn_loss = packed[:, 0, :]                  # GatheringLoss(reduce=False)
        attn_contrast = jnp.mean(packed[:, 1, :])    # contrastive loss (mean over positions)
        attn_gather = jnp.mean(packed[:, 2, :])      # mean max memory-attention score
        return attn_loss, attn_contrast, attn_gather


if __name__ == "__main__":
    # small deterministic example
    N, C, S, D = 2, 16, 16, 32        # batch, query len, key len, head dim
    M = 8                             # n_memory; fea_dim = S (attn_weights last dim)
    key = jax.random.PRNGKey(0)
    kq, kk, km = jax.random.split(key, 3)
    queries = jax.random.normal(kq, (N, C, D), dtype=jnp.float32)
    keys = jax.random.normal(kk, (N, S, D), dtype=jnp.float32)

    attn = AttentionPallas(memory=M, fea_dim=S, contras_temperature=0.1, key=km)
    attn_loss, attn_contrast, attn_gather = attn(queries, keys)
    jax.block_until_ready((attn_loss, attn_contrast, attn_gather))

    assert attn_loss.shape == (N, C)
    assert attn_contrast.shape == ()
    assert attn_gather.shape == ()
    assert bool(jnp.all(jnp.isfinite(attn_loss)))
    assert bool(jnp.isfinite(attn_contrast)) and bool(jnp.isfinite(attn_gather))
    print("KERNEL_OK")
</pallas_src>

<mosaic_0001>
module attributes {stable_mosaic.version = 11 : i64} {
  func.func @kernel(%arg0: i32, %arg1: i32, %arg2: memref<1x32x128xf32, #tpu.memory_space<vmem>>, %arg3: memref<1x16x32xf32, #tpu.memory_space<vmem>>, %arg4: memref<8x16xf32, #tpu.memory_space<vmem>>, %arg5: memref<8x1xf32, #tpu.memory_space<vmem>>, %arg6: memref<1x3x128xf32, #tpu.memory_space<vmem>>) attributes {dimension_semantics = [#tpu.dimension_semantics<parallel>, #tpu.dimension_semantics<parallel>], iteration_bounds = array<i64: 2, 1>, scalar_prefetch = 0 : i64, scratch_operands = 0 : i64, tpu.core_type = #tpu.core_type<tc>, window_params = [{transform_indices = @transform_0, window_bounds = array<i64: 1, 32, 128>}, {transform_indices = @transform_1, window_bounds = array<i64: 1, 16, 32>}, {pipeline_mode = #tpu.pipeline_mode<synchronous>, transform_indices = @transform_2, window_bounds = array<i64: 8, 16>}, {pipeline_mode = #tpu.pipeline_mode<synchronous>, transform_indices = @transform_3, window_bounds = array<i64: 8, 1>}, {transform_indices = @transform_4, window_bounds = array<i64: 1, 3, 128>}]} {
    %c0 = arith.constant 0 : index
    %c0_0 = arith.constant 0 : index
    %c0_1 = arith.constant 0 : index
    %0 = vector.load %arg2[%c0, %c0_0, %c0_1] : memref<1x32x128xf32, #tpu.memory_space<vmem>>, vector<1x32x128xf32>
    %1 = vector.shape_cast %0 : vector<1x32x128xf32> to vector<32x128xf32>
    %c0_2 = arith.constant 0 : index
    %c0_3 = arith.constant 0 : index
    %c0_4 = arith.constant 0 : index
    %2 = vector.load %arg3[%c0_2, %c0_3, %c0_4] : memref<1x16x32xf32, #tpu.memory_space<vmem>>, vector<1x16x32xf32>
    %3 = vector.shape_cast %2 : vector<1x16x32xf32> to vector<16x32xf32>
    %c0_5 = arith.constant 0 : index
    %c0_6 = arith.constant 0 : index
    %4 = vector.load %arg4[%c0_5, %c0_6] : memref<8x16xf32, #tpu.memory_space<vmem>>, vector<8x16xf32>
    %c0_7 = arith.constant 0 : index
    %c0_8 = arith.constant 0 : index
    %5 = vector.load %arg5[%c0_7, %c0_8] : memref<8x1xf32, #tpu.memory_space<vmem>>, vector<8x1xf32>
    %6 = arith.truncf %3 : vector<16x32xf32> to vector<16x32xbf16>
    %7 = arith.truncf %1 : vector<32x128xf32> to vector<32x128xbf16>
    %cst = arith.constant dense<0.000000e+00> : vector<16x128xf32>
    %8 = tpu.matmul %6, %7, %cst {dimension_numbers = #tpu.dot_dimension_numbers<[1], [0], [0], [1], [0, 0, 1, 1], [], []>} : vector<16x32xbf16>, vector<32x128xbf16>, vector<16x128xf32> -> vector<16x128xf32>
    %9 = arith.mulf %8, %8 : vector<16x128xf32>
    %cst_9 = arith.constant dense<0.000000e+00> : vector<128xf32>
    %10 = vector.multi_reduction <add>, %9, %cst_9 [0] : vector<16x128xf32> to vector<128xf32>
    %11 = vector.shape_cast %10 : vector<128xf32> to vector<1x128xf32>
    %cst_10 = arith.constant 1.000000e-24 : f32
    %12 = vector.broadcast %cst_10 : f32 to vector<1x128xf32>
    %13 = arith.maximumf %11, %12 : vector<1x128xf32>
    %14 = math.rsqrt %13 : vector<1x128xf32>
    %15 = arith.mulf %14, %14 : vector<1x128xf32>
    %16 = arith.mulf %11, %15 : vector<1x128xf32>
    %cst_11 = arith.constant dense<0.000000e+00> : vector<8x128xf32>
    %17 = tpu.matmul %4, %8, %cst_11 {dimension_numbers = #tpu.dot_dimension_numbers<[1], [0], [0], [1], [0, 0, 1, 1], [], []>} : vector<8x16xf32>, vector<16x128xf32>, vector<8x128xf32> -> vector<8x128xf32>
    %18 = vector.broadcast %14 : vector<1x128xf32> to vector<8x128xf32>
    %19 = arith.mulf %17, %18 : vector<8x128xf32>
    %cst_12 = arith.constant dense<0xFF800000> : vector<128xf32>
    %20 = vector.multi_reduction <maximumf>, %19, %cst_12 [0] : vector<8x128xf32> to vector<128xf32>
    %21 = vector.shape_cast %20 : vector<128xf32> to vector<1x128xf32>
    %22 = tpu.iota {dimensions = array<i32: 0>} : vector<8x128xi32>
    %23 = arith.sitofp %22 : vector<8x128xi32> to vector<8x128xf32>
    %24 = vector.broadcast %21 : vector<1x128xf32> to vector<8x128xf32>
    %25 = arith.cmpf oeq, %19, %24 : vector<8x128xf32>
    %cst_13 = arith.constant 8.000000e+00 : f32
    %26 = vector.broadcast %cst_13 : f32 to vector<8x128xf32>
    %27 = arith.select %25, %23, %26 : vector<8x128xi1>, vector<8x128xf32>
    %cst_14 = arith.constant dense<0x7F800000> : vector<128xf32>
    %28 = vector.multi_reduction <minimumf>, %27, %cst_14 [0] : vector<8x128xf32> to vector<128xf32>
    %29 = vector.shape_cast %28 : vector<128xf32> to vector<1x128xf32>
    %30 = vector.broadcast %29 : vector<1x128xf32> to vector<8x128xf32>
    %31 = arith.cmpf oeq, %23, %30 : vector<8x128xf32>
    %32 = arith.extui %31 : vector<8x128xi1> to vector<8x128xi32>
    %33 = arith.sitofp %32 : vector<8x128xi32> to vector<8x128xf32>
    %34 = vector.broadcast %5 : vector<8x1xf32> to vector<8x128xf32>
    %35 = arith.mulf %33, %34 : vector<8x128xf32>
    %cst_15 = arith.constant dense<0.000000e+00> : vector<128xf32>
    %36 = vector.multi_reduction <add>, %35, %cst_15 [0] : vector<8x128xf32> to vector<128xf32>
    %37 = vector.shape_cast %36 : vector<128xf32> to vector<1x128xf32>
    %cst_16 = arith.constant 2.000000e+00 : f32
    %38 = vector.broadcast %cst_16 : f32 to vector<1x128xf32>
    %39 = arith.mulf %38, %21 : vector<1x128xf32>
    %40 = arith.subf %16, %39 : vector<1x128xf32>
    %41 = arith.addf %40, %37 : vector<1x128xf32>
    %cst_17 = arith.constant 0.000000e+00 : f32
    %42 = vector.broadcast %cst_17 : f32 to vector<1x128xf32>
    %43 = arith.maximumf %41, %42 : vector<1x128xf32>
    %44 = vector.broadcast %21 : vector<1x128xf32> to vector<8x128xf32>
    %45 = arith.subf %19, %44 : vector<8x128xf32>
    %46 = math.exp %45 : vector<8x128xf32>
    %cst_18 = arith.constant dense<0.000000e+00> : vector<128xf32>
    %47 = vector.multi_reduction <add>, %46, %cst_18 [0] : vector<8x128xf32> to vector<128xf32>
    %48 = vector.shape_cast %47 : vector<128xf32> to vector<1x128xf32>
    %49 = tpu.reciprocal %48 {approx = true} : vector<1x128xf32> -> vector<1x128xf32>
    %cst_19 = arith.constant 1.000000e+01 : f32
    %50 = vector.broadcast %cst_19 : f32 to vector<8x128xf32>
    %51 = arith.mulf %45, %50 : vector<8x128xf32>
    %52 = math.exp %51 : vector<8x128xf32>
    %cst_20 = arith.constant dense<0.000000e+00> : vector<128xf32>
    %53 = vector.multi_reduction <add>, %52, %cst_20 [0] : vector<8x128xf32> to vector<128xf32>
    %54 = vector.shape_cast %53 : vector<128xf32> to vector<1x128xf32>
    %55 = math.log %54 : vector<1x128xf32>
    %56 = tpu.concatenate %43, %55, %49 in 0 : vector<1x128xf32>, vector<1x128xf32>, vector<1x128xf32> -> vector<3x128xf32>
    %c0_21 = arith.constant 0 : index
    %c0_22 = arith.constant 0 : index
    %c0_23 = arith.constant 0 : index
    %57 = vector.load %arg6[%c0_21, %c0_22, %c0_23] : memref<1x3x128xf32, #tpu.memory_space<vmem>>, vector<1x3x128xf32>
    %58 = vector.shape_cast %57 : vector<1x3x128xf32> to vector<3x128xf32>
    %59 = vector.shape_cast %56 : vector<3x128xf32> to vector<1x3x128xf32>
    tpu.vector_store %arg6[%c0_21, %c0_22, %c0_23], %59 {strides = array<i32>} : memref<1x3x128xf32, #tpu.memory_space<vmem>>, vector<1x3x128xf32>,
    return
  }
  func.func @transform_0(%arg0: i32, %arg1: i32) -> (i32, i32, i32) {
    %c0_i32 = arith.constant 0 : i32
    %c0_i32_0 = arith.constant 0 : i32
    return %arg0, %c0_i32, %arg1 : i32, i32, i32
  }
  func.func @transform_1(%arg0: i32, %arg1: i32) -> (i32, i32, i32) {
    %c0_i32 = arith.constant 0 : i32
    %c0_i32_0 = arith.constant 0 : i32
    %c0_i32_1 = arith.constant 0 : i32
    return %arg0, %c0_i32, %c0_i32_0 : i32, i32, i32
  }
  func.func @transform_2(%arg0: i32, %arg1: i32) -> (i32, i32) {
    %c0_i32 = arith.constant 0 : i32
    %c0_i32_0 = arith.constant 0 : i32
    %c0_i32_1 = arith.constant 0 : i32
    return %c0_i32, %c0_i32_0 : i32, i32
  }
  func.func @transform_3(%arg0: i32, %arg1: i32) -> (i32, i32) {
    %c0_i32 = arith.constant 0 : i32
    %c0_i32_0 = arith.constant 0 : i32
    %c0_i32_1 = arith.constant 0 : i32
    return %c0_i32, %c0_i32_0 : i32, i32
  }
  func.func @transform_4(%arg0: i32, %arg1: i32) -> (i32, i32, i32) {
    %c0_i32 = arith.constant 0 : i32
    %c0_i32_0 = arith.constant 0 : i32
    return %arg0, %c0_i32, %arg1 : i32, i32, i32
  }
}

</mosaic_0001>

<bundles_post_ra>
// kernel: tpu_custom_call.1
= control target key start
LH: loop header
LB: loop body
LE: loop exit
PB: predicated region body
PF: predicated region fallthrough
CT: control target
= control target key end

     0   :  { %9 = vsyncpa [#allocation3], 0  ;;  %s1054_s0 = inlined_call_operand.hbm [shape: f32[2,32,128], index: 0, kind: input, shape index: {}]   ;;  %s1055_s1 = inlined_call_operand.hbm [shape: f32[2,16,32], index: 1, kind: input, shape index: {}]   ;;  %s1056_s2 = inlined_call_operand.vmem [shape: f32[8,16], index: 2, kind: input, shape index: {}]   ;;  %s1057_s3 = inlined_call_operand.vmem [shape: f32[8,1], index: 3, kind: input, shape index: {}]   ;;  %s1058_s4 = inlined_call_operand.vmem [shape: f32[2,3,128], index: 4, kind: output, shape index: {}]  }
   0x1   :  { %11 = vsyncpa [#allocation3 + $0x1], 0 }
   0x2   :  { %12 = vsyncpa [#allocation5], 0 }
   0x3   :  { %14 = vsyncpa [#allocation5 + $0x1], 0  ;;  %s865_s15 = smov 0   ;;  %s867_s16 = smov 0  }
   0x4   :  { %s869_s17 = smov 0   ;;  %s871_s18 = smov 0  }
   0x5   :  { %s873_s19 = smov 0   ;;  %s875_s20 = smov 0  }
   0x6 LB: > { %s594_s21 = sadd.s32 4294967295, %s830_s20   ;;  %s32_s22 = sadd.s32 1, %s826_s19  ;;  %s830_s20 = sphi %s875_s20, %s20_s20   ;;  %s826_s19 = sphi %s873_s19, %s1069_s19   ;;  %s822_s18 = sphi %s871_s18, %s1068_s18   ;;  %s818_s17 = sphi %s869_s17, %s1067_s17   ;;  %s814_s16 = sphi %s867_s16, %s1066_s16   ;;  %s810_s15 = sphi %s865_s15, %s1065_s15  }
   0x7   : > { %p34_p0 = scmp.ge.s32.totalorder %s32_s22, 2  ;;  %s41_s23 = sadd.s32 1, %s818_s17 }
   0x8   : > { %p48_p1 = scmp.ne.s32.totalorder %s818_s17, %s814_s16  ;;  %p49_p2 = scmp.eq.s32.totalorder %s830_s20, 0 }
   0x9   : > { %s1071_s22 = smov (%p34_p0, %s32_s22), 0  ;;  %p54_p4 = scmp.ne.s32.totalorder %s814_s16, %s810_s15 }
   0xa   : > { %p901_p3 = por %p49_p2, %p48_p1  ;;  %s36_s25 = ssub.s32 %s826_s19, %s1071_s22 }
   0xb   : > { %p55_p5 = scmp.eq.s32.totalorder %s594_s21, 0  ;;  %p39_p6 = scmp.eq.s32.totalorder %s36_s25, 0 }
   0xc   : > { %p650_p8 = scmp.lt.s32.totalorder %s830_s20, 2  ;;  %s917_s28 = sand.u32 1, %s818_s17  }
   0xd   : > { %p908_p7 = por %p55_p5, %p54_p4  ;;  %s613_s29 = sshll.u32 %s826_s19, 9 }
   0xe   : > { %s914_s27 = scalar_select %p39_p6, %s818_s17, %s41_s23  }
   0xf   : > { %s1061_s26 = scalar_select %p908_p7, 1, 0 }
  0x10   : > { %s598_s30 = sshll.u32 %s917_s28, 5  ;;  %s924_s7 = scalar_lea.hbm %s1054_s0, %s613_s29 }
  0x11   : > { %s184_s8 = scalar_lea.vmem [#allocation2], %s598_s30  ;;  %p928_p9 = pnand %p650_p8, %p901_p3 }
  0x12   : > { %s192_s9 = sshll.u32 %s184_s8, 4  ;;  %s181_s11 = scalar_lea.sflag [#allocation3], %s917_s28  ;;  %s932_s9 = int_to_ptr.vmem [resolvable:$true] %s192_s9 }
  0x13   : > { %s716_s12 = scalar_lea.hbm %s924_s7, 512  ;;  %p718_p11 = pneg %p928_p9 }
  0x14   : > { %p717_p10 = scmp.ne.s32.totalorder %s924_s7, %s716_s12  ;;  %s721_s15 = scalar_lea.hbm %s1054_s0, 1024 }
  0x15   : > { %p722_p0 = scmp.lt.u32.totalorder %s924_s7, %s1054_s0  ;;  %p723_p1 = scmp.lt.u32.totalorder %s721_s15, %s716_s12 }
  0x16   : > { %p719_p12 = pnand %p718_p11, %p717_p10  ;;  %p725_p3 = scmp.lt.u32.totalorder %s716_s12, %s924_s7 }
  0x17   : > { %p724_p2 = por %p723_p1, %p722_p0 }
  0x18   : > { %p720_p13 = pneg %p719_p12 }
  0x19   : > { %p726_p4 = por %p725_p3, %p724_p2 }
  0x1b   : > { %p727_p5 = pnand %p726_p4, %p720_p13 }
  0x1d   : > { %730 = shalt.err (!%p727_p5)
}
  0x1e   : > { %s731_s24 = scalar_lea.vmem %s932_s9, 512  ;;  %s832_s25 = smov [#allocation2]  }
  0x1f   : > { %p732_p6 = scmp.ne.s32.totalorder %s932_s9, %s731_s24  ;;  %s736_s29 = sshll.u32 %s832_s25, 4  ;;  %s737_s29 = int_to_ptr.vmem [resolvable:$false] %s736_s29 }
  0x20   : > { %s738_s30 = scalar_lea.vmem %s737_s29, 1024  ;;  %p739_p12 = scmp.lt.s32.totalorder %s932_s9, %s737_s29 }
  0x21   : > { %p734_p8 = pnand %p732_p6, %p718_p11  ;;  %p740_p0 = scmp.lt.s32.totalorder %s738_s30, %s731_s24 }
  0x23   : > { %p735_p10 = pneg %p734_p8  ;;  %p741_p1 = por %p740_p0, %p739_p12 }
  0x25   : > { %p742_p2 = pnand %p741_p1, %p735_p10 }
  0x27   : > { %745 = shalt.err (!%p742_p2)
}
  0x28   : > { %s833_s5 = smov 128   ;;  %s834_s6 = smov 8  }
  0x29   : > { %646 = dma.hbm_to_vmem [thread:$0]  (!%p928_p9), %s924_s7, 512, %s932_s9, %s181_s11, %s833_s5, %s833_s5, %s834_s6  }
  0x2a   : > { %p604_p13 = scmp.ge.s32.totalorder %s830_s20, 1  ;;  %p221_p3 = scmp.lt.s32.totalorder %s830_s20, 3 }
  0x2b   : > { %s601_s8 = sshll.u32 %s917_s28, 4  ;;  %s614_s13 = sshll.u32 %s826_s19, 8 }
  0x2c   : > { %p968_p4 = pnand %p604_p13, %p221_p3  ;;  %s206_s14 = scalar_lea.vmem [#allocation4], %s601_s8 }
  0x2d   : > { %s213_s15 = sshll.u32 %s206_s14, 4  ;;  %s976_s24 = scalar_lea.hbm %s1055_s1, %s614_s13  ;;  %s978_s15 = int_to_ptr.vmem [resolvable:$true] %s213_s15 }
  0x2e   : > { %s203_s7 = scalar_lea.sflag [#allocation5], %s917_s28  ;;  %s746_s9 = scalar_lea.hbm %s976_s24, 256 }
  0x2f   : > { %p747_p5 = scmp.ne.s32.totalorder %s976_s24, %s746_s9  ;;  %s751_s29 = scalar_lea.hbm %s1055_s1, 512 }
  0x30   : > { %p752_p10 = scmp.lt.u32.totalorder %s976_s24, %s1055_s1  ;;  %p753_p12 = scmp.lt.u32.totalorder %s751_s29, %s746_s9 }
  0x31   : > { %p749_p6 = pnand %p747_p5, %p718_p11  ;;  %p755_p1 = scmp.lt.u32.totalorder %s746_s9, %s976_s24 }
  0x32   : > { %p754_p0 = por %p753_p12, %p752_p10 }
  0x33   : > { %p750_p8 = pneg %p749_p6 }
  0x34   : > { %p756_p2 = por %p755_p1, %p754_p0 }
  0x36   : > { %p757_p13 = pnand %p756_p2, %p750_p8 }
  0x38   : > { %760 = shalt.err (!%p757_p13)
}
  0x39   : > { %s761_s13 = scalar_lea.vmem %s978_s15, 256  ;;  %s835_s14 = smov [#allocation4]  }
  0x3a   : > { %p762_p3 = scmp.ne.s32.totalorder %s978_s15, %s761_s13  ;;  %s766_s21 = sshll.u32 %s835_s14, 4  ;;  %s767_s21 = int_to_ptr.vmem [resolvable:$false] %s766_s21 }
  0x3b   : > { %s768_s23 = scalar_lea.vmem %s767_s21, 512  ;;  %p769_p7 = scmp.lt.s32.totalorder %s978_s15, %s767_s21 }
  0x3c   : > { %p764_p5 = pnand %p762_p3, %p718_p11  ;;  %p770_p10 = scmp.lt.s32.totalorder %s768_s23, %s761_s13 }
  0x3e   : > { %p765_p6 = pneg %p764_p5  ;;  %p771_p12 = por %p770_p10, %p769_p7 }
  0x40   : > { %p772_p0 = pnand %p771_p12, %p765_p6 }
  0x42   : > { %775 = shalt.err (!%p772_p0)
}
  0x43   : > { %649 = dma.hbm_to_vmem [thread:$0]  (!%p928_p9), %s976_s24, 256, %s978_s15, %s203_s7, %s833_s5, %s833_s5, %s834_s6  }
  0x44   : > { %225 = sbr.rel (%p968_p4) target bundleno = 579 (0x243), region = 36  ;;  %s227_s9 = sand.u32 (!%p968_p4), 1, %s814_s16  }
  0x45   : > { %s605_s11 = sshll.u32 (!%p968_p4), %s227_s9, 5  ;;  %s228_s25 = scalar_lea.sflag (!%p968_p4), [#allocation3], %s227_s9 }
  0x46   : > { %s231_s29 = scalar_lea.vmem (!%p968_p4), [#allocation2], %s605_s11  ;;  %p1064_p7 = scmp.ne.s32.totalorder (!%p968_p4), %s1061_s26, 0 }
  0x4b   : > { %801 = dma.done.wait (%p1064_p7), %s228_s25, 512  }
  0x4c   : > { %803 = vsyncadd (%p1064_p7), %s228_s25, 4294966784  ;;  %s606_s10 = sshll.u32 %s227_s9, 4  ;;  %s237_s28 = scalar_lea.sflag [#allocation5], %s227_s9 }
  0x4d   : > { %s240_s30 = scalar_lea.vmem [#allocation4], %s606_s10 }
  0x4e   : > { %805 = dma.done.wait (%p1064_p7), %s237_s28, 256  }
  0x4f   : > { %807 = vsyncadd (%p1064_p7), %s237_s28, 4294967040  ;;  %v836_v0 = vmov 0.0   ;;  %vm837_vm0 = vmmov 0   ;;  %v280_v1 = vld [vmem:[%s231_s29] sm:$0xff]  ;;  %v281_v2 = vld [vmem:[%s231_s29 + $0x8] sm:$0xff]  ;;  %vm291_vm1 = vcmask 261120   ;;  %v430_v34 = vlaneseq }
  0x50   : > { %621 = vmatprep.subr.bf16.mxu0 %v836_v0  ;;  %625 = vmatprep.mubr.msk.bf16.mxu0 %vm837_vm0, %v836_v0  ;;  %v282_v3 = vld [vmem:[%s231_s29 + $0x10] sm:$0xff]  ;;  %v289_v4 = vpack.c.bf16 %v281_v2, %v280_v1  ;;  %v283_v5 = vld [vmem:[%s231_s29 + $0x18] sm:$0xff]  ;;  %v838_v10 = vmov 0.0|0.0   ;;  %v287_v11 = vld [vmem:[%s1057_s3] sm:$0xff]  ;;  %v839_v12 = vmov 0   ;;  %vm349_vm2 = vcmask 130048  }
  0x51   : > { %633 = vmatprep.mubr.msk.f32.mxu1 %vm837_vm0, %v836_v0  ;;  %v290_v6 = vpack.c.bf16 %v283_v5, %v282_v3  ;;  %v284_v7 = vld [vmem:[%s240_s30] sm:$0xff]  ;;  %v285_v8 = vld [vmem:[%s240_s30 + $0x8] sm:$0xff]  ;;  %636 = vmatprep.subr.bf16.mxu1 %v838_v10  ;;  %v431_v37 = vshrl.u32 %v430_v34, 7  ;;  %p272_p9 = scmp.lt.s32.totalorder %s822_s18, 1  ;;  %vm481_vm5 = vcmask 1040384   ;;  %vm483_vm6 = vcmask 1041408  }
  0x52   : > { %622 = vmatpush3.bf16.msra.mxu0 %v289_v4  ;;  %v288_v9 = vpack.c.bf16 %v285_v8, %v284_v7  ;;  %705 = vset.pattern.permute.xlu0 %v839_v12  ;;  %v286_v21 = vld [vmem:[%s1056_s2] sm:$0xff] }
  0x53   : > { %623 = vmatprep.subr.bf16.mxu0 %v836_v0  ;;  %446 = vperm.xlu0 %705, %v287_v11   ;;  %v432_v41 = vcvt.s32.f32 %v431_v37  ;;  %s1073_s18 = smov (!%p272_p9, %s822_s18), 1 }
  0x54   : > { %s607_s15 = sshll.u32 %s1073_s18, 2 }
  0x55   : > { %s278_s8 = scalar_lea.vmem %s1058_s4, %s607_s15 }
  0x56   : > { %624 = vmatpush3.bf16.msra.mxu0 %v290_v6 }
  0x59   : > { %626 = vmatmul.mubr.msk.bf16.vlgmr.msra.gmra.mrb[0].mxu0 %vm291_vm1, %v288_v9 }
  0xd2   : > { %v447_v57 = vpop.permute.xlu0 %446 }
 0x12c   : > { %v329_v13 = vpop.f32.mrb[0].mxu0 }
 0x12d   : > { %v627_v14 = vpop.f32.mrb[1].mxu0  ;;  %v336_v16 = vmul.f32 %v329_v13, %v329_v13 }
 0x12e   : > { %v332_v15 = vpop.f32.mrb[2].mxu0 }
 0x12f   : > { %v337_v17 = vmul.f32 %v332_v15, %v332_v15  ;;  %v628_v18 = vpop.f32.mrb[3].mxu0  ;;  %v637_v19 = vpack.c.bf16 %v332_v15, %v329_v13 }
 0x131   : > { %v338_v20 = vadd.f32 %v337_v17, %v336_v16  ;;  %638 = vmatpush3.bf16.msra.mxu1 %v637_v19 }
 0x133   : > { %v339_v22 = vrot.slane %v338_v20, 4 }
 0x134   : > { %634 = vmatmul.mubr.msk.f32.vlgmr.msra.gmra.mrb[0].mxu1 %vm349_vm2, %v286_v21 }
 0x135   : > { %v340_v23 = vadd.f32 %v339_v22, %v338_v20 }
 0x137   : > { %v341_v24 = vrot.slane %v340_v23, 2 }
 0x139   : > { %v342_v25 = vadd.f32 %v341_v24, %v340_v23 }
 0x13b   : > { %v343_v26 = vrot.slane %v342_v25, 1 }
 0x13d   : > { %v344_v27 = vadd.f32 %v343_v26, %v342_v25 }
 0x13f   : > { %v345_v28 = vmax.f32 %v344_v27, 1e-24 }
 0x141   : > { %706 = vrsqrt.f32 %v345_v28 }
 0x14b   : > { %v707_v29 = vpop.eup %706 }
 0x14c   : > { %v347_v40 = vmul.f32 %v707_v29, %v707_v29 }
 0x14e   : > { %v348_v44 = vmul.f32 %v347_v40, %v344_v27 }
 0x207   : > { %v419_v30 = vpop.f32.mrb[0].mxu1 }
 0x208   : > { %v423_v31 = vmul.f32 %v707_v29, %v419_v30  ;;  %v635_v32 = vpop.f32.mrb[1].mxu1 }
 0x20a   : > { %v424_v33 = vrot.slane %v423_v31, 4 }
 0x20c   : > { %v425_v35 = vmax.f32 %v423_v31, %v424_v33 }
 0x20e   : > { %v426_v36 = vrot.slane %v425_v35, 2 }
 0x210   : > { %v427_v38 = vmax.f32 %v425_v35, %v426_v36 }
 0x212   : > { %v428_v39 = vrot.slane %v427_v38, 1 }
 0x214   : > { %v429_v42 = vmax.f32 %v427_v38, %v428_v39 }
 0x216   : > { %v460_v43 = vsub.f32 %v423_v31, %v429_v42  ;;  %vm433_vm3 = vcmp.eq.f32.partialorder %v423_v31, %v429_v42  ;;  %v456_v45 = vmul.f32 2.0, %v429_v42 }
 0x217   : > { %v434_v46 = vsel %vm433_vm3, %v432_v41, 8.0 }
 0x218   : > { %v461_v47 = vmul.f32 1.442695, %v460_v43  ;;  %v470_v48 = vmul.f32 10.0, %v460_v43  ;;  %v435_v49 = vrot.slane %v434_v46, 4  ;;  %v457_v50 = vsub.f32 %v348_v44, %v456_v45 }
 0x21a   : > { %708 = vpow2.f32 %v461_v47  ;;  %v471_v51 = vmul.f32 1.442695, %v470_v48  ;;  %v436_v52 = vmin.f32 %v434_v46, %v435_v49 }
 0x21c   : > { %710 = vpow2.f32 %v471_v51  ;;  %v437_v53 = vrot.slane %v436_v52, 2 }
 0x21e   : > { %v438_v54 = vmin.f32 %v436_v52, %v437_v53 }
 0x220   : > { %v439_v55 = vrot.slane %v438_v54, 1 }
 0x222   : > { %v440_v56 = vmin.f32 %v438_v54, %v439_v55 }
 0x224   : > { %v709_v58 = vpop.eup %708  ;;  %vm441_vm4 = vcmp.eq.f32.partialorder %v432_v41, %v440_v56 }
 0x225   : > { %v463_v59 = vrot.slane %v709_v58, 4  ;;  %v610_v60 = vsel %vm441_vm4, 1.0, %v836_v0 }
 0x226   : > { %v711_v61 = vpop.eup %710  ;;  %v449_v62 = vmul.f32 %v610_v60, %v447_v57 }
 0x227   : > { %v464_v63 = vadd.f32 %v709_v58, %v463_v59  ;;  %v473_v1 = vrot.slane %v711_v61, 4 }
 0x228   : > { %v450_v2 = vrot.slane %v449_v62, 4 }
 0x229   : > { %v465_v3 = vrot.slane %v464_v63, 2  ;;  %v474_v4 = vadd.f32 %v711_v61, %v473_v1 }
 0x22a   : > { %v451_v5 = vadd.f32 %v450_v2, %v449_v62 }
 0x22b   : > { %v466_v6 = vadd.f32 %v465_v3, %v464_v63  ;;  %v475_v7 = vrot.slane %v474_v4, 2 }
 0x22c   : > { %v452_v8 = vrot.slane %v451_v5, 2 }
 0x22d   : > { %v476_v9 = vadd.f32 %v475_v7, %v474_v4  ;;  %v467_v10 = vrot.slane %v466_v6, 1 }
 0x22e   : > { %v453_v11 = vadd.f32 %v452_v8, %v451_v5 }
 0x22f   : > { %v477_v12 = vrot.slane %v476_v9, 1  ;;  %v468_v0 = vadd.f32 %v467_v10, %v466_v6 }
 0x230   : > { %v454_v13 = vrot.slane %v453_v11, 1 }
 0x231   : > { %v478_v14 = vadd.f32 %v477_v12, %v476_v9 }
 0x232   : > { %v455_v15 = vadd.f32 %v454_v13, %v453_v11 }
 0x233   : > { %712 = vlog2.f32 %v478_v14 }
 0x234   : > { %v458_v16 = vadd.f32 %v457_v50, %v455_v15  ;;  %714 = vrcp.f32 %v468_v0 }
 0x236   : > { %v459_v18 = vmax.f32 %v458_v16, 0.0 }
 0x23d   : > { %v713_v17 = vpop.eup %712 }
 0x23e   : > { %v480_v19 = vmul.f32 0.6931472, %v713_v17  ;;  %v715_v20 = vpop.eup %714 }
 0x240   : > { %v482_v21 = vsel %vm481_vm5, %v459_v18, %v480_v19 }
 0x241   : > { %v484_v22 = vsel %vm483_vm6, %v482_v21, %v715_v20 }
 0x242   : > { %485 = vst [vmem:[%s278_s8] sm:$0x7] %v484_v22 }
 0x243 PF: > { %s20_s20 = sadd.s32 1, %s830_s20   ;;  %s1065_s15 = smov %s814_s16 }
 0x244   : > { %p17_p11 = scmp.ge.s32.totalorder %s20_s20, 4   ;;  %s1066_s16 = smov %s818_s17 }
 0x245   : > { %s1067_s17 = smov %s914_s27  ;;  %s1068_s18 = smov %s826_s19 }
 0x246   : > { %s1069_s19 = smov %s1071_s22  ;;  %19 = sbr.rel (!%p17_p11) target bundleno = 6 (0x6), region = 89 }
 0x24d   :  { %511 = vsyncpa [#allocation3], 1 }
 0x24e   :  { %513 = vsyncpa [#allocation3 + $0x1], 1 }
 0x24f   :  { %514 = vsyncpa [#allocation5], 1 }
 0x250   :  { %516 = vsyncpa [#allocation5 + $0x1], 1 }

</bundles_post_ra>
